<compile_context>
chip_gen: v7x
topology: tpu7x:2x2x1
jax: 0.10.0
libtpu: 0.0.40
codegen_flags: <defaults>
</compile_context>

<pallas_src>
import jax
import jax.numpy as jnp
from jax.experimental import pallas as pl
from jax.experimental.pallas import tpu as pltpu


# f32 working-set budget per block-sized array (~2 MiB).  Double-buffered
# inputs + a few f32 temporaries stay well inside every default scoped-VMEM
# limit (v5e 16 MiB, v6e/v7x 32 MiB), so no vmem_limit_bytes is needed.
_TARGET_BLOCK_F32_BYTES = 2 * 1024 * 1024


def _round_up(x, m):
    return ((x + m - 1) // m) * m


def _make_kernel(n_rows, n_cols, tile_rows, tile_l, grid_l, fold_L):
    """Build the per-block kernel; all shapes are Python constants.

    n_rows, n_cols : logical (possibly folded) 2-D array shape.
    tile_rows, tile_l : block shape.
    grid_l : number of chunks along the (folded) length axis.
    fold_L : original sequence length if G rows were folded into the lane
             axis (junction diffs must be masked), else None.
    """
    ragged_rows = (n_rows % tile_rows) != 0
    ragged_cols = (n_cols % tile_l) != 0
    chunked = grid_l > 1
    assert not (chunked and fold_L is not None)

    def kernel(x_ref, o_ref, *scratch):
        i = pl.program_id(0)
        l = pl.program_id(1)
        x = x_ref[...].astype(jnp.float32)

        # conv1d(weight=[-1, 1], bias=1) == forward difference + 1.
        d = x[:, 1:] - x[:, :-1] + jnp.float32(1.0)
        sq = d * d

        if fold_L is not None or ragged_cols:
            col = jax.lax.broadcasted_iota(jnp.int32, (1, tile_l - 1), 1)
            if fold_L is not None:
                # Rows folded into the lane axis: diffs straddling two original
                # rows are not part of the conv output.
                sq = jnp.where(col % fold_L != fold_L - 1, sq, jnp.float32(0.0))
            if ragged_cols:
                # Ragged last L chunk: drop diffs whose left element lies at or
                # beyond the true end of the row (garbage data).
                sq = jnp.where(l * tile_l + col < n_cols - 1, sq, jnp.float32(0.0))

        if chunked:
            # Diff across the chunk boundary: first column of this chunk minus
            # the carried last column of the previous chunk.
            carry_ref = scratch[0]
            d0 = x[:, 0:1] - carry_ref[...] + jnp.float32(1.0)
            s0 = jnp.where(l > 0, d0 * d0, jnp.float32(0.0))
        else:
            s0 = None

        if ragged_rows:
            # Ragged last row block: zero garbage rows (global row >= n_rows).
            row = jax.lax.broadcasted_iota(jnp.int32, (tile_rows, 1), 0)
            row_ok = (i * tile_rows + row) < n_rows
            sq = jnp.where(row_ok, sq, jnp.float32(0.0))
            if s0 is not None:
                s0 = jnp.where(row_ok, s0, jnp.float32(0.0))

        block_sum = jnp.sum(sq)
        if s0 is not None:
            block_sum = block_sum + jnp.sum(s0)

        if not chunked:
            # One lane-dense, full-width unmasked (8, 128) store per block.
            o_ref[...] = jnp.full((1, 8, 128), block_sum, dtype=jnp.float32)
        else:
            @pl.when(l == 0)
            def _():
                o_ref[...] = jnp.zeros_like(o_ref)

            o_ref[...] = o_ref[...] + block_sum
            # Carry this chunk's last column for the next chunk's boundary diff.
            scratch[0][...] = x[:, tile_l - 1:tile_l]

    return kernel


def mse_smoothness_loss(pred, *, tile_rows=None, tile_l=None, allow_fold=True):
    """pred: (N, 1, L) array (PyTorch Conv1d NCL layout). Returns scalar loss."""
    x = jnp.asarray(pred)          # keep native dtype; cast per tile in-kernel
    N, C, L = x.shape
    assert C == 1, "module's Conv1d expects a single input channel"
    assert L >= 2, "kernel_size=2 conv needs L >= 2"

    itemsize = jnp.dtype(x.dtype).itemsize
    sub = max(8, 32 // max(1, itemsize))   # sublane multiple: f32->8, bf16->16, 8-bit->32

    # ---- layout: optionally fold G rows into the lane axis (free reshape) ----
    fold_L = None
    N2, L2 = N, L
    if allow_fold and tile_l is None and L < 128 and N > 1:
        target_g = max(1, 1024 // L)
        g = 1
        for cand in range(min(N, target_g), 1, -1):
            if N % cand == 0:
                g = cand
                break
        if g > 1:
            N2, L2 = N // g, g * L
            fold_L = L
    x = x.reshape(N2, L2)

    # ---- tile selection (budget against the lane-padded f32 footprint) ------
    lane_row_bytes = _round_up(L2, 128) * 4
    if tile_l is None:
        if lane_row_bytes * sub <= _TARGET_BLOCK_F32_BYTES:
            tile_l = L2                              # whole (folded) row per block
        else:
            # Very long rows: chunk L (second grid axis + 1-column carry).
            tile_l = max(128, (_TARGET_BLOCK_F32_BYTES // (sub * 4)) // 128 * 128)
    tile_l = int(tile_l)
    if tile_l >= L2:
        tile_l = L2
    else:
        tile_l = max(128, (tile_l // 128) * 128)     # keep the (8,128) rule
        if tile_l >= L2:
            tile_l = L2
    grid_l = pl.cdiv(L2, tile_l)

    if tile_rows is None:
        if tile_l == L2:
            tile_rows = max(sub, (_TARGET_BLOCK_F32_BYTES // lane_row_bytes) // sub * sub)
        else:
            tile_rows = sub
    tile_rows = max(sub, _round_up(int(tile_rows), sub))
    # v7x megacore: prefer >= 2 row blocks so both TensorCores get work;
    # costs nothing on single-TC v5e / v6e.
    tile_rows = min(tile_rows, max(sub, _round_up(pl.cdiv(N2, 2), sub)))
    if tile_rows >= N2:
        tile_rows = N2                                # single full-dim row block
    grid_n = pl.cdiv(N2, tile_rows)

    kernel = _make_kernel(N2, L2, tile_rows, tile_l, grid_l, fold_L)

    scratch_shapes = []
    if grid_l > 1:
        scratch_shapes.append(pltpu.VMEM((tile_rows, 1), jnp.float32))

    partials = pl.pallas_call(
        kernel,
        out_shape=jax.ShapeDtypeStruct((grid_n, 8, 128), jnp.float32),
        grid=(grid_n, grid_l),
        in_specs=[pl.BlockSpec((tile_rows, tile_l), lambda i, l: (i, l))],
        out_specs=pl.BlockSpec((1, 8, 128), lambda i, l: (i, 0, 0)),
        scratch_shapes=scratch_shapes,
        compiler_params=pltpu.CompilerParams(
            dimension_semantics=("parallel", "arbitrary"),
        ),
    )(x)

    # Each block's partial sum is replicated across its (8, 128) tile; take one
    # copy per block, reduce across blocks once, divide once.
    return jnp.sum(partials[:, 0, 0]) / jnp.float32(N * (L - 1))


def _reference(pred):
    p = jnp.asarray(pred, jnp.float32)
    d = p[:, 0, 1:] - p[:, 0, :-1] + 1.0
    return jnp.mean(d * d)


if __name__ == "__main__":
    key = jax.random.PRNGKey(0)
    k1, k2, k3, k4 = jax.random.split(key, 4)

    # 1) Small shape from the module: (batch=2, channels=1, seq=16).
    #    Default path: L < 128 so rows fold into the lane axis.
    pred1 = jax.random.normal(k1, (2, 1, 16), dtype=jnp.float32)
    out1 = jax.block_until_ready(mse_smoothness_loss(pred1))
    ref1 = _reference(pred1)
    assert jnp.allclose(out1, ref1, rtol=1e-5, atol=1e-6), (out1, ref1)

    # 2) Multi-row-block path with a ragged, masked last block (fold disabled).
    pred2 = jax.random.normal(k2, (100, 1, 16), dtype=jnp.float32)
    out2 = jax.block_until_ready(
        mse_smoothness_loss(pred2, tile_rows=16, allow_fold=False))
    ref2 = _reference(pred2)
    assert jnp.allclose(out2, ref2, rtol=1e-4, atol=1e-5), (out2, ref2)

    # 3) Chunked-L path (second grid axis + 1-column carry), ragged last chunk.
    pred3 = jax.random.normal(k3, (4, 1, 300), dtype=jnp.float32)
    out3 = jax.block_until_ready(mse_smoothness_loss(pred3, tile_l=128))
    ref3 = _reference(pred3)
    assert jnp.allclose(out3, ref3, rtol=1e-4, atol=1e-5), (out3, ref3)

    # 4) Native bf16 input: no wrapper-side cast, per-tile cast in-kernel.
    pred4 = jax.random.normal(k4, (8, 1, 16), dtype=jnp.bfloat16)
    out4 = jax.block_until_ready(mse_smoothness_loss(pred4))
    ref4 = _reference(pred4)
    assert jnp.allclose(out4, ref4, rtol=1e-3, atol=1e-3), (out4, ref4)

    print("KERNEL_OK")
</pallas_src>

<mosaic_0001>
module attributes {stable_mosaic.version = 11 : i64} {
  func.func @kernel(%arg0: i32, %arg1: i32, %arg2: memref<1x32xf32, #tpu.memory_space<vmem>>, %arg3: memref<1x8x128xf32, #tpu.memory_space<vmem>>) attributes {dimension_semantics = [#tpu.dimension_semantics<parallel>, #tpu.dimension_semantics<arbitrary>], iteration_bounds = array<i64: 1, 1>, scalar_prefetch = 0 : i64, scratch_operands = 0 : i64, tpu.core_type = #tpu.core_type<tc>, window_params = [{transform_indices = @transform_0, window_bounds = array<i64: 1, 32>}, {transform_indices = @transform_1, window_bounds = array<i64: 1, 8, 128>}]} {
    %c0 = arith.constant 0 : index
    %c0_0 = arith.constant 0 : index
    %0 = vector.load %arg2[%c0, %c0_0] : memref<1x32xf32, #tpu.memory_space<vmem>>, vector<1x32xf32>
    %1 = vector.extract_strided_slice %0 {offsets = [0, 1], sizes = [1, 31], strides = [1, 1]} : vector<1x32xf32> to vector<1x31xf32>
    %2 = vector.extract_strided_slice %0 {offsets = [0, 0], sizes = [1, 31], strides = [1, 1]} : vector<1x32xf32> to vector<1x31xf32>
    %3 = arith.subf %1, %2 : vector<1x31xf32>
    %cst = arith.constant 1.000000e+00 : f32
    %4 = vector.broadcast %cst : f32 to vector<1x31xf32>
    %5 = arith.addf %3, %4 : vector<1x31xf32>
    %6 = arith.mulf %5, %5 : vector<1x31xf32>
    %7 = tpu.iota {dimensions = array<i32: 1>} : vector<1x31xi32>
    %c16_i32 = arith.constant 16 : i32
    %c0_i32 = arith.constant 0 : i32
    %8 = arith.cmpi eq, %c16_i32, %c0_i32 : i32
    %c1_i32 = arith.constant 1 : i32
    %9 = arith.select %8, %c1_i32, %c16_i32 : i32
    %10 = vector.broadcast %9 : i32 to vector<1x31xi32>
    %11 = arith.remsi %7, %10 : vector<1x31xi32>
    %c0_i32_1 = arith.constant 0 : i32
    %12 = vector.broadcast %c0_i32_1 : i32 to vector<1x31xi32>
    %13 = arith.cmpi ne, %11, %12 : vector<1x31xi32>
    %c0_i32_2 = arith.constant 0 : i32
    %14 = vector.broadcast %c0_i32_2 : i32 to vector<1x31xi32>
    %15 = arith.cmpi slt, %11, %14 : vector<1x31xi32>
    %c0_i32_3 = arith.constant 0 : i32
    %16 = arith.cmpi slt, %9, %c0_i32_3 : i32
    %17 = vector.broadcast %16 : i1 to vector<1x31xi1>
    %18 = vector.broadcast %17 : vector<1x31xi1> to vector<1x31xi1>
    %19 = arith.xori %15, %18 : vector<1x31xi1>
    %20 = arith.andi %19, %13 : vector<1x31xi1>
    %21 = vector.broadcast %9 : i32 to vector<1x31xi32>
    %22 = arith.addi %11, %21 : vector<1x31xi32>
    %23 = arith.select %20, %22, %11 : vector<1x31xi1>, vector<1x31xi32>
    %c15_i32 = arith.constant 15 : i32
    %24 = vector.broadcast %c15_i32 : i32 to vector<1x31xi32>
    %25 = arith.cmpi ne, %23, %24 : vector<1x31xi32>
    %cst_4 = arith.constant 0.000000e+00 : f32
    %26 = vector.broadcast %cst_4 : f32 to vector<1x31xf32>
    %27 = arith.select %25, %6, %26 : vector<1x31xi1>, vector<1x31xf32>
    %28 = vector.shape_cast %27 : vector<1x31xf32> to vector<1x1x31xf32>
    %cst_5 = arith.constant dense<0.000000e+00> : vector<1xf32>
    %29 = vector.multi_reduction <add>, %28, %cst_5 [1, 2] : vector<1x1x31xf32> to vector<1xf32>
    %30 = vector.shape_cast %29 : vector<1xf32> to vector<1x1x1xf32>
    %31 = vector.extract %30[0, 0, 0] : f32 from vector<1x1x1xf32>
    %32 = vector.broadcast %31 : f32 to vector<1x8x128xf32>
    %c0_6 = arith.constant 0 : index
    %c0_7 = arith.constant 0 : index
    %c0_8 = arith.constant 0 : index
    %33 = vector.load %arg3[%c0_6, %c0_7, %c0_8] : memref<1x8x128xf32, #tpu.memory_space<vmem>>, vector<1x8x128xf32>
    tpu.vector_store %arg3[%c0_6, %c0_7, %c0_8], %32 {strides = array<i32>} : memref<1x8x128xf32, #tpu.memory_space<vmem>>, vector<1x8x128xf32>,
    return
  }
  func.func @transform_0(%arg0: i32, %arg1: i32) -> (i32, i32) {
    %c0_i32 = arith.constant 0 : i32
    return %arg0, %arg1 : i32, i32
  }
  func.func @transform_1(%arg0: i32, %arg1: i32) -> (i32, i32, i32) {
    %c0_i32 = arith.constant 0 : i32
    %c0_i32_0 = arith.constant 0 : i32
    %c0_i32_1 = arith.constant 0 : i32
    return %arg0, %c0_i32, %c0_i32_0 : i32, i32, i32
  }
}

</mosaic_0001>

<bundles_post_ra>
// kernel: tpu_custom_call.1
= control target key start
LH: loop header
LB: loop body
LE: loop exit
PB: predicated region body
PF: predicated region fallthrough
CT: control target
= control target key end

     0   :  { %6 = vsyncpa [#allocation3], 0  ;;  %s173_s0 = inlined_call_operand.hbm [shape: f32[1,32], index: 0, kind: input, shape index: {}]   ;;  %s174_s1 = inlined_call_operand.hbm [shape: f32[1,8,128], index: 1, kind: output, shape index: {}]  }
   0x1   :  { %7 = vsyncpa [#allocation4], 0  ;;  %s135_s6 = smov [#allocation2]   ;;  %s87_s10 = scalar_lea.hbm %s173_s0, 16 }
   0x2   :  { %s14_s7 = sshll.u32 %s135_s6, 4  ;;  %p88_p0 = scmp.ne.s32.totalorder %s173_s0, %s87_s10  ;;  %s15_s7 = int_to_ptr.vmem [resolvable:$true] %s14_s7 }
   0x3   :  { %p91_p1 = scmp.lt.u32.totalorder %s87_s10, %s173_s0 }
   0x5   :  { %p93_p2 = pnand %p91_p1, %p88_p0 }
   0x7   :  { %96 = shalt.err (!%p93_p2)
}
   0x8   :  { %s97_s15 = scalar_lea.vmem %s15_s7, 16  ;;  %s101_s16 = scalar_lea.vmem %s15_s7, 32 }
   0x9   :  { %p98_p3 = scmp.ne.s32.totalorder %s15_s7, %s97_s15  ;;  %p102_p4 = scmp.lt.s32.totalorder %s15_s7, %s15_s7 }
   0xa   :  { %p103_p5 = scmp.lt.s32.totalorder %s101_s16, %s97_s15 }
   0xc   :  { %p104_p6 = por %p103_p5, %p102_p4 }
   0xe   :  { %p105_p7 = pnand %p104_p6, %p98_p3 }
  0x10   :  { %108 = shalt.err (!%p105_p7)
}
  0x11   :  { %17 = dma.hbm_to_vmem [thread:$0]  %s173_s0, 16, %s15_s7, [#allocation3]  }
  0x12   :  { %131 = dma.done.wait [#allocation3], 16  }
  0x13   :  { %132 = vsyncadd [#allocation3], 4294967280  ;;  %v21_v0 = vld [vmem:[#allocation2] sm:$0x1]  ;;  %s136_s19 = smov 1   ;;  %v29_v1 = vlaneseq  ;;  %s137_s20 = smov 127  }
  0x14   :  { %23 = vrot.lane.b32.xlu0 %v21_v0, %s136_s19  ;;  %vm53_vm1 = vcmask 245760   ;;  %s138_s0 = smov [#allocation5]  }
  0x15   :  { %v46_v2 = vshrl.u32 %v29_v1, 7  ;;  %v30_v9 = vand.u32 127, %v29_v1  ;;  %s72_s21 = sshll.u32 %s138_s0, 4  ;;  %s73_s21 = int_to_ptr.vmem [resolvable:$true] %s72_s21 }
  0x16   :  { %s109_s23 = scalar_lea.vmem %s73_s21, 128  ;;  %p114_p9 = scmp.lt.s32.totalorder %s73_s21, %s73_s21 }
  0x17   :  { %v47_v5 = vsub.s32 0, %v46_v2  ;;  %v35_v10 = vand.u32 15, %v30_v9  ;;  %p110_p8 = scmp.ne.s32.totalorder %s73_s21, %s109_s23  ;;  %p115_p10 = scmp.lt.s32.totalorder %s109_s23, %s109_s23 }
  0x19   :  { %vm43_vm0 = vcmp.ne.s32.totalorder %v35_v10, 15  ;;  %p116_p11 = por %p115_p10, %p114_p9 }
  0x1b   :  { %p117_p12 = pnand %p116_p11, %p110_p8 }
  0x86   :  { %v24_v3 = vpop.permute.xlu0 %23 }
  0x87   :  { %v26_v4 = vsub.f32 %v21_v0, %v24_v3 }
  0x89   :  { %v27_v6 = vadd.f32 1.0, %v26_v4 }
  0x8b   :  { %v28_v7 = vmul.f32 %v27_v6, %v27_v6 }
  0x8d   :  { %v48_v8 = vrot.slane %v28_v7, %v47_v5 }
  0x8f   :  { %49 = vrot.lane.b32.xlu0 %v48_v8, %s137_s20 }
 0x101   :  { %v50_v11 = vpop.permute.xlu0 %49 }
 0x102   :  { %v52_v12 = vsel %vm43_vm0, %v50_v11, 0.0 }
 0x103   :  { %v54_v13 = vsel %vm53_vm1, %v52_v12, 0.0 }
 0x104   :  { %55 = vadd.xlane.f32.xlu1 %v54_v13 }
 0x191   :  { %v56_v14 = vpop.xlane.xlu1 %55 }
 0x192   :  { %v57_v15 = vrot.slane %v56_v14, 4 }
 0x194   :  { %v58_v16 = vadd.f32 %v57_v15, %v56_v14 }
 0x196   :  { %v59_v17 = vrot.slane %v58_v16, 2 }
 0x198   :  { %v60_v18 = vadd.f32 %v59_v17, %v58_v16 }
 0x19a   :  { %v61_v19 = vrot.slane %v60_v18, 1 }
 0x19c   :  { %v62_v20 = vadd.f32 %v61_v19, %v60_v18 }
 0x19e   :  { %81 = vpush %v62_v20 }
 0x1cf   :  { %s82_s22 = spop %81 }
 0x1d0   :  { %v64_v21 = vstv %s82_s22 }
 0x1d1   :  { %65 = vst [vmem:[#allocation5] sm:$0xff] %v64_v21 }
 0x1d2   :  { %120 = shalt.err (!%p117_p12)
}
 0x1d3   :  { %s121_s26 = scalar_lea.hbm %s174_s1, 128 }
 0x1d4   :  { %p122_p13 = scmp.ne.s32.totalorder %s174_s1, %s121_s26  ;;  %p125_p0 = scmp.lt.u32.totalorder %s121_s26, %s174_s1 }
 0x1d6   :  { %p127_p1 = pnand %p125_p0, %p122_p13 }
 0x1d8   :  { %130 = shalt.err (!%p127_p1)
}
 0x1d9   :  { %75 = dma.vmem_to_hbm [thread:$0]  %s73_s21, 128, %s174_s1, [#allocation4]  }
 0x1da   :  { %133 = dma.done.wait [#allocation4], 128  }
 0x1db   :  { %134 = vsyncadd [#allocation4], 4294967168 }
 0x1dc   :  { %79 = vsyncpa [#allocation3], 1 }
 0x1dd   :  { %80 = vsyncpa [#allocation4], 1 }

</bundles_post_ra>
